<compile_context>
chip_gen: v5e
topology: v5e:2x2
jax: 0.10.0
libtpu: 0.0.40
codegen_flags: <defaults>
</compile_context>

<pallas_src>
import functools

import jax
import jax.numpy as jnp
from jax.experimental import pallas as pl
from jax.experimental.pallas import tpu as pltpu

RMS_EPS = 1.1920929e-07  # torch.finfo(torch.float32).eps (nn.RMSNorm eps=None default)


def _vmem_limit_bytes():
    """~75% of physical VMEM: ~96 MiB on v5e/v6e (128 MiB), ~48 MiB on v7x (64 MiB).
    Falls back to a v7x-safe 48 MiB if the query is unavailable."""
    cap = 64 * 1024 * 1024
    try:
        cap = int(pltpu.get_tpu_info().vmem_capacity_bytes)
    except Exception:
        pass
    return int(min(100 * 1024 * 1024, (cap // 4) * 3))


_VMEM_LIMIT = _vmem_limit_bytes()


def _pick_tile(dim, cap, lane=False):
    """Largest tile <= cap dividing dim that satisfies TPU block-shape rules
    (lane dim: multiple of 128; sublane dim: multiple of 8); else the full dim
    (full-extent blocks are exempt from the (8,128) rule)."""
    cands = (cap, 1024, 512, 256, 128) if lane else (cap, 512, 256, 128, 64, 32, 16, 8)
    for t in cands:
        if t <= cap and t <= dim and dim % t == 0:
            return t
    return dim


# ---------------------------------------------------------------------------
# Tiled, pipelined projection matmul: x @ w.T with w kept in its stored
# (out_features, in_features) layout -> no HBM-side weight transpose.
# ---------------------------------------------------------------------------
def _matmul_nt_kernel(x_ref, w_ref, o_ref, acc_ref):
    @pl.when(pl.program_id(2) == 0)
    def _():
        acc_ref[...] = jnp.zeros(acc_ref.shape, acc_ref.dtype)

    # x: (tm, tk), w: (tn, tk) -> contract both minor axes (== x @ w.T tile).
    acc_ref[...] += jax.lax.dot_general(
        x_ref[...], w_ref[...],
        dimension_numbers=(((1,), (1,)), ((), ())),
        preferred_element_type=jnp.float32)

    @pl.when(pl.program_id(2) == pl.num_programs(2) - 1)
    def _():
        o_ref[...] = acc_ref[...].astype(o_ref.dtype)


def pallas_matmul_nt(x, w, out_dtype=None):
    """x: (M, K), w: (N, K) as stored -> (M, N) == x @ w.T; dtype follows x."""
    M, K = x.shape
    N, K2 = w.shape
    assert K == K2
    out_dtype = x.dtype if out_dtype is None else out_dtype
    tm = _pick_tile(M, 512)
    tk = _pick_tile(K, 512, lane=True)
    tn = _pick_tile(N, 512, lane=True)
    return pl.pallas_call(
        _matmul_nt_kernel,
        out_shape=jax.ShapeDtypeStruct((M, N), out_dtype),
        grid=(M // tm, N // tn, K // tk),
        in_specs=[pl.BlockSpec((tm, tk), lambda i, j, k: (i, k)),
                  pl.BlockSpec((tn, tk), lambda i, j, k: (j, k))],
        out_specs=pl.BlockSpec((tm, tn), lambda i, j, k: (i, j)),
        scratch_shapes=[pltpu.VMEM((tm, tn), jnp.float32)],
        compiler_params=pltpu.CompilerParams(
            dimension_semantics=("parallel", "parallel", "arbitrary"),
            vmem_limit_bytes=_VMEM_LIMIT),
    )(x, w)


# ---------------------------------------------------------------------------
# Flash-style two-simplicial attention with fused qk/v RMSNorm.
#   sim[i,j,k] = sum_d q[i,d] k1[j,d] k2[k,d]   (q pre-scaled by dim_head^-0.5)
#   attn       = softmax over the flattened (j,k) axis
#   out[i,d]   = sum_{j,k} attn[i,j,k] v1[j,d] v2[k,d]
# Grid: (batch*heads, q-tiles, j-tiles, k-tiles); (j,k) are online-softmax
# reduction axes. Per grid step the j tile is walked in batches of jb rows:
# one score matmul + one PV matmul (with a fused ones-column row-sum) per batch.
# ---------------------------------------------------------------------------
def _two_simplicial_flash_kernel(q_ref, k1_ref, k2_ref, v1_ref, v2_ref, nw_ref,
                                 o_ref, m_sc, l_sc, acc_sc, qn_sc, k1n_sc, v1n_sc,
                                 *, jb, mxu_dtype=None):
    j = pl.program_id(2)
    k = pl.program_id(3)
    d = q_ref.shape[-1]
    tq = q_ref.shape[1]
    tj = k1_ref.shape[1]
    scale = float(d) ** -0.5

    def rms(x, w):
        xf = x.astype(jnp.float32)
        ms = jnp.mean(xf * xf, axis=-1, keepdims=True)
        return xf * jax.lax.rsqrt(ms + RMS_EPS) * w

    qw, k1w, k2w, v1w, v2w = [nw_ref[i:i + 1, :] for i in range(5)]

    # ---- per-(bh, q-tile): init softmax state + cache normalized/scaled q ----
    @pl.when(jnp.logical_and(j == 0, k == 0))
    def _():
        m_sc[...] = jnp.full(m_sc.shape, -jnp.inf, m_sc.dtype)
        l_sc[...] = jnp.zeros(l_sc.shape, l_sc.dtype)
        acc_sc[...] = jnp.zeros(acc_sc.shape, acc_sc.dtype)
        qn_sc[...] = rms(q_ref[0], qw) * scale

    # ---- per-(bh, j-tile): k1/v1 are invariant along the innermost k axis,
    #      so normalize the whole tile once here instead of per inner row ----
    @pl.when(k == 0)
    def _():
        k1n_sc[...] = rms(k1_ref[0], k1w)
        v1n_sc[...] = rms(v1_ref[0], v1w)

    # ---- per-step (k2/v2 blocks change every grid step) ----
    k2n = rms(k2_ref[0], k2w)                                    # (tk, d) f32
    v2n = rms(v2_ref[0], v2w)                                    # (tk, d) f32
    tk_ = k2n.shape[0]
    # ones column: the softmax row-sum rides the PV matmul on the MXU.
    v2aug = jnp.concatenate([v2n, jnp.ones((tk_, 1), jnp.float32)], axis=-1)
    k2_mxu = k2n if mxu_dtype is None else k2n.astype(mxu_dtype)
    v2_mxu = v2aug if mxu_dtype is None else v2aug.astype(mxu_dtype)

    q_n = qn_sc[...]                                             # (tq, d) f32
    n_blk = tj // jb

    # TODO(synk): pack multiple heads onto the lane axis (d=16 uses only 16/128
    # lanes for the VPU-side norm/acc math and the output store); needs a
    # block-diagonal contraction — EUP(exp) is still the binding unit at d=16.
    def body(b_idx, carry):
        m_prev, l_prev, acc_prev = carry
        off = pl.multiple_of(b_idx * jb, jb)

        # Stack jb q*k1 slabs -> one (jb*tq, d) LHS so the score and PV
        # contractions each run as a single MXU call per jb key rows.
        qk1 = jnp.concatenate(
            [q_n * k1n_sc[pl.ds(off + t, 1), :] for t in range(jb)], axis=0)
        if mxu_dtype is not None:
            qk1 = qk1.astype(mxu_dtype)
        s = jax.lax.dot_general(                                 # (jb*tq, tk)
            qk1, k2_mxu,
            dimension_numbers=(((1,), (1,)), ((), ())),
            preferred_element_type=jnp.float32)

        # block max per query row, combined across the jb sub-slabs
        m_new = m_prev
        for t in range(jb):
            m_new = jnp.maximum(
                m_new, jnp.max(s[t * tq:(t + 1) * tq, :], axis=-1, keepdims=True))
        alpha = jnp.exp(m_prev - m_new)                          # (tq, 1)

        m_rep = jnp.concatenate([m_new] * jb, axis=0)            # (jb*tq, 1)
        p = jnp.exp(s - m_rep)                                   # (jb*tq, tk) f32
        if mxu_dtype is not None:
            p = p.astype(mxu_dtype)
        pv = jnp.dot(p, v2_mxu, preferred_element_type=jnp.float32)  # (jb*tq, d+1)

        acc_new = alpha * acc_prev
        l_new = alpha * l_prev
        for t in range(jb):
            pv_t = pv[t * tq:(t + 1) * tq, :]
            acc_new = acc_new + pv_t[:, :d] * v1n_sc[pl.ds(off + t, 1), :]
            l_new = l_new + pv_t[:, d:]                          # fused row-sum
        return m_new, l_new, acc_new

    # (m, l, acc) ride the loop as carries -> no per-row VMEM round trip.
    m_f, l_f, acc_f = jax.lax.fori_loop(
        0, n_blk, body, (m_sc[...], l_sc[...], acc_sc[...]))
    m_sc[...] = m_f
    l_sc[...] = l_f
    acc_sc[...] = acc_f

    @pl.when(jnp.logical_and(j == pl.num_programs(2) - 1,
                             k == pl.num_programs(3) - 1))
    def _():
        # Deferred softmax normalization: one EUP reciprocal per query row.
        o_ref[0] = (acc_f * pl.reciprocal(l_f, approx=True)).astype(o_ref.dtype)


def pallas_two_simplicial_attention(q, k1, k2, v1, v2, norm_w,
                                    tile_caps=(256, 512, 512), mxu_dtype=None):
    """q,k1,k2,v1,v2: (B*H, N, D); norm_w: (5, D) rows = [q, k1, k2, v1, v2].
    mxu_dtype=jnp.bfloat16 halves the MXU feed on v6e/v7x; leave None on v5e."""
    BH, N, Dh = q.shape
    Dv = v1.shape[-1]
    assert Dh == Dv, "this config uses dim_head_values == dim_head"
    tq = _pick_tile(N, tile_caps[0])
    tj = _pick_tile(N, tile_caps[1])
    tk = _pick_tile(N, tile_caps[2])
    jb = 1
    for cand in (8, 4, 2):
        if tj % cand == 0:
            jb = cand
            break

    kernel = functools.partial(_two_simplicial_flash_kernel, jb=jb,
                               mxu_dtype=mxu_dtype)

    return pl.pallas_call(
        kernel,
        out_shape=jax.ShapeDtypeStruct((BH, N, Dv), q.dtype),
        grid=(BH, N // tq, N // tj, N // tk),
        in_specs=[
            pl.BlockSpec((1, tq, Dh), lambda bh, qi, j, k: (bh, qi, 0)),
            pl.BlockSpec((1, tj, Dh), lambda bh, qi, j, k: (bh, j, 0)),
            pl.BlockSpec((1, tk, Dh), lambda bh, qi, j, k: (bh, k, 0)),
            pl.BlockSpec((1, tj, Dv), lambda bh, qi, j, k: (bh, j, 0)),
            pl.BlockSpec((1, tk, Dv), lambda bh, qi, j, k: (bh, k, 0)),
            # packed RMSNorm weights: constant block index -> fetched once.
            pl.BlockSpec((5, Dh), lambda bh, qi, j, k: (0, 0)),
        ],
        out_specs=pl.BlockSpec((1, tq, Dv), lambda bh, qi, j, k: (bh, qi, 0)),
        scratch_shapes=[pltpu.VMEM((tq, 1), jnp.float32),     # running max
                        pltpu.VMEM((tq, 1), jnp.float32),     # running denom
                        pltpu.VMEM((tq, Dv), jnp.float32),    # output accumulator
                        pltpu.VMEM((tq, Dh), jnp.float32),    # cached rms(q)*scale
                        pltpu.VMEM((tj, Dh), jnp.float32),    # cached rms(k1)
                        pltpu.VMEM((tj, Dv), jnp.float32)],   # cached rms(v1)
        compiler_params=pltpu.CompilerParams(
            # (bh, q-tile) axes shard across TensorCores (v7x megacore);
            # (j, k) are the online-softmax reduction axes.
            dimension_semantics=("parallel", "parallel", "arbitrary", "arbitrary"),
            vmem_limit_bytes=_VMEM_LIMIT),
    )(q, k1, k2, v1, v2, norm_w)


# ---------------------------------------------------------------------------
# Full forward (glue: splits / head split+merge in plain JAX).
# ---------------------------------------------------------------------------
def higher_order_attention_forward(tokens, params, heads, dim_head,
                                   dim_head_values, kv_sets=2,
                                   attn_tile_caps=(256, 512, 512),
                                   mxu_dtype=None):
    assert kv_sets == 2, "this kernel implements two-simplicial attention"
    B, N, D = tokens.shape
    # prenorm / postnorm = Identity (module defaults)
    x = tokens.reshape(B * N, D)
    # weights consumed as stored (PyTorch Linear (out, in)); no HBM-side .T.
    qkv = pallas_matmul_nt(x, params["w_qkv"]).reshape(B, N, -1)

    split0 = heads * dim_head
    split1 = kv_sets * heads * dim_head              # key_value_heads == heads
    q = qkv[..., :split0]
    k = qkv[..., split0:split0 + split1]
    v = qkv[..., split0 + split1:]

    # split heads: 'b n (h d) -> b h n d'
    # TODO(synk): fuse these relayouts into the projection/attention BlockSpecs
    # (blocked today: per-head offsets at dim_head=16 are not 128-lane aligned).
    q = q.reshape(B, N, heads, dim_head).transpose(0, 2, 1, 3)
    k = k.reshape(B, N, heads, kv_sets * dim_head).transpose(0, 2, 1, 3)
    v = v.reshape(B, N, heads, kv_sets * dim_head_values).transpose(0, 2, 1, 3)

    k1, k2 = k[..., :dim_head], k[..., dim_head:]
    v1, v2 = v[..., :dim_head_values], v[..., dim_head_values:]

    norm_w = jnp.stack([params["q_norm_w"],
                        params["k_norm_w"][0], params["k_norm_w"][1],
                        params["v_norm_w"][0], params["v_norm_w"][1]], axis=0)

    flat = lambda t: t.reshape(B * heads, N, t.shape[-1])
    out = pallas_two_simplicial_attention(
        flat(q), flat(k1), flat(k2), flat(v1), flat(v2), norm_w,
        tile_caps=attn_tile_caps, mxu_dtype=mxu_dtype)

    # merge heads 'b h n d -> b n (h d)' then combine_heads linear
    out = out.reshape(B, heads, N, dim_head_values).transpose(0, 2, 1, 3)
    out = out.reshape(B * N, heads * dim_head_values)
    out = pallas_matmul_nt(out, params["w_out"], out_dtype=tokens.dtype)
    return out.reshape(B, N, D)


# ---------------------------------------------------------------------------
# Pure-jnp reference (same semantics) for correctness checks.
# ---------------------------------------------------------------------------
def reference_forward(tokens, params, heads, dim_head, dim_head_values, kv_sets=2):
    def rms(x, w):
        ms = jnp.mean(x * x, axis=-1, keepdims=True)
        return x * jax.lax.rsqrt(ms + RMS_EPS) * w

    B, N, D = tokens.shape
    qkv = tokens @ params["w_qkv"].T
    split0 = heads * dim_head
    split1 = kv_sets * heads * dim_head
    q = qkv[..., :split0].reshape(B, N, heads, dim_head).transpose(0, 2, 1, 3)
    k = qkv[..., split0:split0 + split1].reshape(
        B, N, heads, kv_sets * dim_head).transpose(0, 2, 1, 3)
    v = qkv[..., split0 + split1:].reshape(
        B, N, heads, kv_sets * dim_head_values).transpose(0, 2, 1, 3)
    k1, k2 = k[..., :dim_head], k[..., dim_head:]
    v1, v2 = v[..., :dim_head_values], v[..., dim_head_values:]

    q = rms(q, params["q_norm_w"]) * (dim_head ** -0.5)
    k1 = rms(k1, params["k_norm_w"][0])
    k2 = rms(k2, params["k_norm_w"][1])
    v1 = rms(v1, params["v_norm_w"][0])
    v2 = rms(v2, params["v_norm_w"][1])

    sim = jnp.einsum('bhid,bhjd,bhkd->bhijk', q, k1, k2)
    attn = jax.nn.softmax(sim.reshape(B, heads, N, N * N), axis=-1)
    attn = attn.reshape(B, heads, N, N, N)
    out = jnp.einsum('bhijk,bhjd,bhkd->bhid', attn, v1, v2)
    out = out.transpose(0, 2, 1, 3).reshape(B, N, heads * dim_head_values)
    return out @ params["w_out"].T


if __name__ == "__main__":
    B, N, DIM = 2, 8, 32
    HEADS, DIM_HEAD = 4, 16
    DIM_HEAD_V = DIM_HEAD
    KV_SETS = 2

    key = jax.random.PRNGKey(0)
    kt, kq, ko, kn, kt2 = jax.random.split(key, 5)
    kn1, kn2, kn3, kn4, kn5 = jax.random.split(kn, 5)

    sum_split = HEADS * DIM_HEAD + KV_SETS * HEADS * DIM_HEAD + KV_SETS * HEADS * DIM_HEAD_V
    params = {
        "w_qkv": jax.random.normal(kq, (sum_split, DIM), jnp.float32) * 0.05,
        "w_out": jax.random.normal(ko, (DIM, HEADS * DIM_HEAD_V), jnp.float32) * 0.05,
        # RMSNorm weights (default init is ones; perturb deterministically so the
        # weight multiply is actually exercised)
        "q_norm_w": 1.0 + 0.1 * jax.random.normal(kn1, (DIM_HEAD,), jnp.float32),
        "k_norm_w": (1.0 + 0.1 * jax.random.normal(kn2, (DIM_HEAD,), jnp.float32),
                     1.0 + 0.1 * jax.random.normal(kn3, (DIM_HEAD,), jnp.float32)),
        "v_norm_w": (1.0 + 0.1 * jax.random.normal(kn4, (DIM_HEAD_V,), jnp.float32),
                     1.0 + 0.1 * jax.random.normal(kn5, (DIM_HEAD_V,), jnp.float32)),
    }
    tokens = jax.random.normal(kt, (B, N, DIM), jnp.float32)

    # --- check 1: small shapes, f32 MXU operands (single-tile path) ---
    out = higher_order_attention_forward(tokens, params, HEADS, DIM_HEAD,
                                         DIM_HEAD_V, KV_SETS)
    out = jax.block_until_ready(out)
    ref = reference_forward(tokens, params, HEADS, DIM_HEAD, DIM_HEAD_V, KV_SETS)
    assert out.shape == (B, N, DIM)
    err = float(jnp.max(jnp.abs(out - ref)))
    assert jnp.allclose(out, ref, atol=5e-3, rtol=5e-3), err

    # --- check 2: longer sequence, forced multi-tile online-softmax path and
    # bf16 MXU operands (v6e/v7x path); looser tolerance for bf16 ---
    N2 = 32
    tokens2 = jax.random.normal(kt2, (B, N2, DIM), jnp.float32)
    out2 = higher_order_attention_forward(
        tokens2, params, HEADS, DIM_HEAD, DIM_HEAD_V, KV_SETS,
        attn_tile_caps=(16, 8, 16), mxu_dtype=jnp.bfloat16)
    out2 = jax.block_until_ready(out2)
    ref2 = reference_forward(tokens2, params, HEADS, DIM_HEAD, DIM_HEAD_V, KV_SETS)
    err2 = float(jnp.max(jnp.abs(out2 - ref2)))
    assert jnp.allclose(out2, ref2, atol=5e-2, rtol=5e-2), err2

    print("KERNEL_OK")
</pallas_src>

<mosaic_0001>
module attributes {stable_mosaic.version = 11 : i64} {
  func.func @_matmul_nt_kernel(%arg0: i32, %arg1: i32, %arg2: i32, %arg3: memref<16x32xf32, #tpu.memory_space<vmem>>, %arg4: memref<320x32xf32, #tpu.memory_space<vmem>>, %arg5: memref<16x320xf32, #tpu.memory_space<vmem>>, %arg6: memref<16x320xf32, #tpu.memory_space<vmem>>) attributes {dimension_semantics = [#tpu.dimension_semantics<parallel>, #tpu.dimension_semantics<parallel>, #tpu.dimension_semantics<arbitrary>], iteration_bounds = array<i64: 1, 1, 1>, scalar_prefetch = 0 : i64, scratch_operands = 1 : i64, tpu.core_type = #tpu.core_type<tc>, window_params = [{transform_indices = @transform_0, window_bounds = array<i64: 16, 32>}, {transform_indices = @transform_1, window_bounds = array<i64: 320, 32>}, {transform_indices = @transform_2, window_bounds = array<i64: 16, 320>}]} {
    %c0_i32 = arith.constant 0 : i32
    %0 = arith.cmpi eq, %arg2, %c0_i32 : i32
    %1 = arith.extui %0 : i1 to i32
    %c0_i32_0 = arith.constant 0 : i32
    %2 = arith.cmpi ne, %1, %c0_i32_0 : i32
    scf.if %2 {
      %cst_10 = arith.constant 0.000000e+00 : f32
      %12 = vector.broadcast %cst_10 : f32 to vector<16x320xf32>
      %c0_11 = arith.constant 0 : index
      %c0_12 = arith.constant 0 : index
      %13 = vector.load %arg6[%c0_11, %c0_12] : memref<16x320xf32, #tpu.memory_space<vmem>>, vector<16x320xf32>
      tpu.vector_store %arg6[%c0_11, %c0_12], %12 {strides = array<i32>} : memref<16x320xf32, #tpu.memory_space<vmem>>, vector<16x320xf32>,
    } else {
    }
    %c0 = arith.constant 0 : index
    %c0_1 = arith.constant 0 : index
    %3 = vector.load %arg6[%c0, %c0_1] : memref<16x320xf32, #tpu.memory_space<vmem>>, vector<16x320xf32>
    %c0_2 = arith.constant 0 : index
    %c0_3 = arith.constant 0 : index
    %4 = vector.load %arg3[%c0_2, %c0_3] : memref<16x32xf32, #tpu.memory_space<vmem>>, vector<16x32xf32>
    %c0_4 = arith.constant 0 : index
    %c0_5 = arith.constant 0 : index
    %5 = vector.load %arg4[%c0_4, %c0_5] : memref<320x32xf32, #tpu.memory_space<vmem>>, vector<320x32xf32>
    %cst = arith.constant dense<0.000000e+00> : vector<16x320xf32>
    %6 = tpu.matmul %4, %5, %cst {dimension_numbers = #tpu.dot_dimension_numbers<[1], [1], [0], [0], [0, 0, 1, 0], [], []>} : vector<16x32xf32>, vector<320x32xf32>, vector<16x320xf32> -> vector<16x320xf32>
    %7 = arith.addf %3, %6 : vector<16x320xf32>
    %c0_6 = arith.constant 0 : index
    %c0_7 = arith.constant 0 : index
    %8 = vector.load %arg6[%c0_6, %c0_7] : memref<16x320xf32, #tpu.memory_space<vmem>>, vector<16x320xf32>
    tpu.vector_store %arg6[%c0_6, %c0_7], %7 {strides = array<i32>} : memref<16x320xf32, #tpu.memory_space<vmem>>, vector<16x320xf32>,
    %c0_i32_8 = arith.constant 0 : i32
    %9 = arith.cmpi eq, %arg2, %c0_i32_8 : i32
    %10 = arith.extui %9 : i1 to i32
    %c0_i32_9 = arith.constant 0 : i32
    %11 = arith.cmpi ne, %10, %c0_i32_9 : i32
    scf.if %11 {
      %c0_10 = arith.constant 0 : index
      %c0_11 = arith.constant 0 : index
      %12 = vector.load %arg6[%c0_10, %c0_11] : memref<16x320xf32, #tpu.memory_space<vmem>>, vector<16x320xf32>
      %c0_12 = arith.constant 0 : index
      %c0_13 = arith.constant 0 : index
      %13 = vector.load %arg5[%c0_12, %c0_13] : memref<16x320xf32, #tpu.memory_space<vmem>>, vector<16x320xf32>
      tpu.vector_store %arg5[%c0_12, %c0_13], %12 {strides = array<i32>} : memref<16x320xf32, #tpu.memory_space<vmem>>, vector<16x320xf32>,
    } else {
    }
    return
  }
  func.func @transform_0(%arg0: i32, %arg1: i32, %arg2: i32) -> (i32, i32) {
    %c0_i32 = arith.constant 0 : i32
    return %arg0, %arg2 : i32, i32
  }
  func.func @transform_1(%arg0: i32, %arg1: i32, %arg2: i32) -> (i32, i32) {
    %c0_i32 = arith.constant 0 : i32
    return %arg1, %arg2 : i32, i32
  }
  func.func @transform_2(%arg0: i32, %arg1: i32, %arg2: i32) -> (i32, i32) {
    %c0_i32 = arith.constant 0 : i32
    return %arg0, %arg1 : i32, i32
  }
}

</mosaic_0001>

<bundles_post_ra>
// kernel: tpu_custom_call.1
= control target key start
LH: loop header
LB: loop body
LE: loop exit
PB: predicated region body
PF: predicated region fallthrough
CT: control target
= control target key end

     0   :  { %vm71_vm0 = vcmask 261120   ;;  %s621_s0 = inlined_call_operand.vmem [shape: f32[16,32], index: 0, kind: input, shape index: {}]   ;;  %s622_s1 = inlined_call_operand.vmem [shape: f32[320,32], index: 1, kind: input, shape index: {}]   ;;  %s623_s2 = inlined_call_operand.hbm [shape: f32[16,320], index: 2, kind: output, shape index: {}]  }
   0x1   :  { %v62_v0 = vld [vmem:[%s622_s1 + $0xf8] sm:$0xff]  ;;  %v61_v2 = vld [vmem:[%s622_s1 + $0xf0] sm:$0xff]  ;;  %v60_v5 = vld [vmem:[%s622_s1 + $0xe8] sm:$0xff] }
   0x2   :  { %v46_v1 = vld [vmem:[%s622_s1 + $0x78] sm:$0xff]  ;;  %331 = vmatpush.xpose.msk.msra.mxu1 %vm71_vm0, %v62_v0  ;;  %v45_v3 = vld [vmem:[%s622_s1 + $0x70] sm:$0xff]  ;;  %v44_v6 = vld [vmem:[%s622_s1 + $0x68] sm:$0xff] }
   0x3   :  { %359 = vmatpush.xpose.msk.msra.mxu3 %vm71_vm0, %v46_v1  ;;  %313 = vmatpush.xpose.msk.msra.mxu0 %vm71_vm0, %v46_v1  ;;  %v70_v4 = vld [vmem:[%s622_s1 + $0x138] sm:$0xff]  ;;  %v69_v7 = vld [vmem:[%s622_s1 + $0x130] sm:$0xff] }
   0x4   :  { %349 = vmatpush.xpose.msk.msra.mxu2 %vm71_vm0, %v70_v4 }
   0x6   :  { %332 = vmatpush.xpose.msk.msra.mxu1 %vm71_vm0, %v61_v2 }
   0x7   :  { %360 = vmatpush.xpose.msk.msra.mxu3 %vm71_vm0, %v45_v3  ;;  %314 = vmatpush.xpose.msk.msra.mxu0 %vm71_vm0, %v45_v3 }
   0xa   :  { %333 = vmatpush.xpose.msk.msra.mxu1 %vm71_vm0, %v60_v5 }
   0xb   :  { %361 = vmatpush.xpose.msk.msra.mxu3 %vm71_vm0, %v44_v6 }
   0xc   :  { %7 = vsyncpa [#allocation4], 0  ;;  %v59_v8 = vld [vmem:[%s622_s1 + $0xe0] sm:$0xff]  ;;  %315 = vmatpush.xpose.msk.msra.mxu0 %vm71_vm0, %v44_v6  ;;  %350 = vmatpush.xpose.msk.msra.mxu2 %vm71_vm0, %v69_v7  ;;  %v68_v10 = vld [vmem:[%s622_s1 + $0x128] sm:$0xff]  ;;  %vm18_vm1 = vcmask 523264   ;;  %v405_v42 = vmov 0.0  }
   0xd   :  { %v43_v9 = vld [vmem:[%s622_s1 + $0x60] sm:$0xff]  ;;  %v58_v11 = vld [vmem:[%s622_s1 + $0xd8] sm:$0xff]  ;;  %v57_v14 = vld [vmem:[%s622_s1 + $0xd0] sm:$0xff]  ;;  %19 = vst.msk [vmem:[#allocation2 + $0x10] sm:$0xff] %vm18_vm1, %v405_v42  ;;  %s301_s11 = sshll.u32 %s623_s2, 4  ;;  %s407_s12 = smov 384   ;;  %s302_s11 = int_to_ptr.hbm [resolvable:$true] %s301_s11 }
   0xe   :  { %334 = vmatpush.xpose.msk.msra.mxu1 %vm71_vm0, %v59_v8  ;;  %v42_v12 = vld [vmem:[%s622_s1 + $0x58] sm:$0xff]  ;;  %v67_v13 = vld [vmem:[%s622_s1 + $0x120] sm:$0xff]  ;;  %v41_v15 = vld [vmem:[%s622_s1 + $0x50] sm:$0xff]  ;;  %22 = vst.msk [vmem:[#allocation2 + $0x28] sm:$0xff] %vm18_vm1, %v405_v42  ;;  %s408_s13 = smov 24  }
   0xf   :  { %362 = vmatpush.xpose.msk.msra.mxu3 %vm71_vm0, %v43_v9  ;;  %v66_v16 = vld [vmem:[%s622_s1 + $0x118] sm:$0xff]  ;;  %v56_v17 = vld [vmem:[%s622_s1 + $0xc8] sm:$0xff]  ;;  %v65_v19 = vld [vmem:[%s622_s1 + $0x110] sm:$0xff] }
  0x10   :  { %316 = vmatpush.xpose.msk.msra.mxu0 %vm71_vm0, %v43_v9  ;;  %351 = vmatpush.xpose.msk.msra.mxu2 %vm71_vm0, %v68_v10  ;;  %v40_v18 = vld [vmem:[%s622_s1 + $0x48] sm:$0xff]  ;;  %v55_v20 = vld [vmem:[%s622_s1 + $0xc0] sm:$0xff]  ;;  %v54_v23 = vld [vmem:[%s622_s1 + $0xb8] sm:$0xff] }
  0x11   :  { %v39_v21 = vld [vmem:[%s622_s1 + $0x40] sm:$0xff]  ;;  %v64_v22 = vld [vmem:[%s622_s1 + $0x108] sm:$0xff]  ;;  %v38_v24 = vld [vmem:[%s622_s1 + $0x38] sm:$0xff] }
  0x12   :  { %335 = vmatpush.xpose.msk.msra.mxu1 %vm71_vm0, %v58_v11  ;;  %v63_v25 = vld [vmem:[%s622_s1 + $0x100] sm:$0xff]  ;;  %v53_v26 = vld [vmem:[%s622_s1 + $0xb0] sm:$0xff]  ;;  %v52_v29 = vld [vmem:[%s622_s1 + $0xa8] sm:$0xff] }
  0x13   :  { %363 = vmatpush.xpose.msk.msra.mxu3 %vm71_vm0, %v42_v12  ;;  %v37_v27 = vld [vmem:[%s622_s1 + $0x30] sm:$0xff]  ;;  %v29_v28 = vld [vmem:[%s621_s0] sm:$0xff]  ;;  %v36_v30 = vld [vmem:[%s622_s1 + $0x28] sm:$0xff] }
  0x14   :  { %317 = vmatpush.xpose.msk.msra.mxu0 %vm71_vm0, %v42_v12  ;;  %352 = vmatpush.xpose.msk.msra.mxu2 %vm71_vm0, %v67_v13  ;;  %v51_v31 = vld [vmem:[%s622_s1 + $0xa0] sm:$0xff]  ;;  %v30_v33 = vld [vmem:[%s621_s0 + $0x8] sm:$0xff]  ;;  %v50_v34 = vld [vmem:[%s622_s1 + $0x98] sm:$0xff] }
  0x15   :  { %v35_v32 = vld [vmem:[%s622_s1 + $0x20] sm:$0xff]  ;;  %v34_v35 = vld [vmem:[%s622_s1 + $0x18] sm:$0xff]  ;;  %v49_v36 = vld [vmem:[%s622_s1 + $0x90] sm:$0xff] }
  0x16   :  { %336 = vmatpush.xpose.msk.msra.mxu1 %vm71_vm0, %v57_v14  ;;  %v33_v37 = vld [vmem:[%s622_s1 + $0x10] sm:$0xff]  ;;  %v48_v38 = vld [vmem:[%s622_s1 + $0x88] sm:$0xff]  ;;  %v47_v40 = vld [vmem:[%s622_s1 + $0x80] sm:$0xff] }
  0x17   :  { %364 = vmatpush.xpose.msk.msra.mxu3 %vm71_vm0, %v41_v15  ;;  %v32_v39 = vld [vmem:[%s622_s1 + $0x8] sm:$0xff]  ;;  %v31_v41 = vld [vmem:[%s622_s1] sm:$0xff]  ;;  %v25_v43 = vld [vmem:[#allocation2 + $0x10] sm:$0xff]  ;;  %s406_s1 = smov [#allocation3]  }
  0x18   :  { %318 = vmatpush.xpose.msk.msra.mxu0 %vm71_vm0, %v41_v15  ;;  %353 = vmatpush.xpose.msk.msra.mxu2 %vm71_vm0, %v66_v16  ;;  %v28_v46 = vld [vmem:[#allocation2 + $0x28] sm:$0xff]  ;;  %s299_s8 = sshll.u32 %s406_s1, 4  ;;  %s300_s8 = int_to_ptr.vmem [resolvable:$true] %s299_s8 }
  0x1a   :  { %337 = vmatpush.xpose.msk.msra.mxu1 %vm71_vm0, %v56_v17 }
  0x1b   :  { %365 = vmatpush.xpose.msk.msra.mxu3 %vm71_vm0, %v40_v18 }
  0x1c   :  { %319 = vmatpush.xpose.msk.msra.mxu0 %vm71_vm0, %v40_v18  ;;  %354 = vmatpush.xpose.msk.msra.mxu2 %vm71_vm0, %v65_v19 }
  0x1e   :  { %338 = vmatpush.xpose.msk.msra.mxu1 %vm71_vm0, %v55_v20 }
  0x1f   :  { %366 = vmatpush.xpose.msk.msra.mxu3 %vm71_vm0, %v39_v21 }
  0x20   :  { %320 = vmatpush.xpose.msk.msra.mxu0 %vm71_vm0, %v39_v21  ;;  %355 = vmatpush.xpose.msk.msra.mxu2 %vm71_vm0, %v64_v22 }
  0x22   :  { %339 = vmatpush.xpose.msk.msra.mxu1 %vm71_vm0, %v54_v23 }
  0x23   :  { %367 = vmatpush.xpose.msk.msra.mxu3 %vm71_vm0, %v38_v24 }
  0x24   :  { %321 = vmatpush.xpose.msk.msra.mxu0 %vm71_vm0, %v38_v24  ;;  %356 = vmatpush.xpose.msk.msra.mxu2 %vm71_vm0, %v63_v25 }
  0x26   :  { %340 = vmatpush.xpose.msk.msra.mxu1 %vm71_vm0, %v53_v26 }
  0x27   :  { %368 = vmatpush.xpose.msk.msra.mxu3 %vm71_vm0, %v37_v27  ;;  %357 = vmatmul.msk.f32.vlgmr.msra.gmra.mxu2 %vm71_vm0, %v29_v28 }
  0x28   :  { %322 = vmatpush.xpose.msk.msra.mxu0 %vm71_vm0, %v37_v27 }
  0x2a   :  { %341 = vmatpush.xpose.msk.msra.mxu1 %vm71_vm0, %v52_v29 }
  0x2b   :  { %369 = vmatpush.xpose.msk.msra.mxu3 %vm71_vm0, %v36_v30 }
  0x2c   :  { %323 = vmatpush.xpose.msk.msra.mxu0 %vm71_vm0, %v36_v30 }
  0x2e   :  { %342 = vmatpush.xpose.msk.msra.mxu1 %vm71_vm0, %v51_v31 }
  0x2f   :  { %370 = vmatpush.xpose.msk.msra.mxu3 %vm71_vm0, %v35_v32  ;;  %358 = vmatmul.msk.f32.gmra.mxu2 %vm71_vm0, %v30_v33 }
  0x30   :  { %324 = vmatpush.xpose.msk.msra.mxu0 %vm71_vm0, %v35_v32 }
  0x32   :  { %343 = vmatpush.xpose.msk.msra.mxu1 %vm71_vm0, %v50_v34 }
  0x33   :  { %371 = vmatpush.xpose.msk.msra.mxu3 %vm71_vm0, %v34_v35 }
  0x34   :  { %325 = vmatpush.xpose.msk.msra.mxu0 %vm71_vm0, %v34_v35 }
  0x36   :  { %344 = vmatpush.xpose.msk.msra.mxu1 %vm71_vm0, %v49_v36 }
  0x37   :  { %372 = vmatpush.xpose.msk.msra.mxu3 %vm71_vm0, %v33_v37 }
  0x38   :  { %326 = vmatpush.xpose.msk.msra.mxu0 %vm71_vm0, %v33_v37 }
  0x3a   :  { %345 = vmatpush.xpose.msk.msra.mxu1 %vm71_vm0, %v48_v38 }
  0x3b   :  { %373 = vmatpush.xpose.msk.msra.mxu3 %vm71_vm0, %v32_v39 }
  0x3c   :  { %327 = vmatpush.xpose.msk.msra.mxu0 %vm71_vm0, %v32_v39 }
  0x3e   :  { %346 = vmatpush.xpose.msk.msra.mxu1 %vm71_vm0, %v47_v40 }
  0x3f   :  { %374 = vmatpush.xpose.msk.msra.mxu3 %vm71_vm0, %v31_v41 }
  0x40   :  { %328 = vmatpush.xpose.msk.msra.mxu0 %vm71_vm0, %v31_v41 }
  0x41   :  { %347 = vmatmul.msk.f32.vlgmr.msra.gmra.mxu1 %vm71_vm0, %v29_v28 }
  0x42   :  { %330 = vmatmul.msk.f32.vlgmr.msra.gmra.mxu3 %vm71_vm0, %v30_v33 }
  0x43   :  { %329 = vmatmul.msk.f32.vlgmr.msra.gmra.mxu0 %vm71_vm0, %v29_v28 }
  0x49   :  { %348 = vmatmul.msk.f32.gmra.mxu1 %vm71_vm0, %v30_v33 }
  0xaa   :  { %v261_v44 = vpop.f32.mrf.mxu2 }
  0xab   :  { %v269_v45 = vadd.f32 %v261_v44, %v25_v43 }
  0xad   :  { %276 = vst.msk [vmem:[#allocation2 + $0x10] sm:$0xff] %vm18_vm1, %v269_v45 }
  0xb2   :  { %v264_v47 = vpop.f32.mrf.mxu2 }
  0xb3   :  { %v272_v48 = vadd.f32 %v264_v47, %v28_v46 }
  0xb4   :  { %v285_v49 = vld [vmem:[#allocation2 + $0x10] sm:$0xff] }
  0xb5   :  { %291 = vst.msk [vmem:[#allocation3 + $0x10] sm:$0xff] %vm18_vm1, %v285_v49 }
  0xb6   :  { %279 = vst.msk [vmem:[#allocation2 + $0x28] sm:$0xff] %vm18_vm1, %v272_v48 }
  0xbd   :  { %v288_v50 = vld [vmem:[#allocation2 + $0x28] sm:$0xff] }
  0xbe   :  { %v238_v51 = vpop.f32.mrf.mxu1  ;;  %294 = vst.msk [vmem:[#allocation3 + $0x28] sm:$0xff] %vm18_vm1, %v288_v50 }
  0xbf   :  { %290 = vst [vmem:[#allocation3 + $0x8] sm:$0xff] %v238_v51 }
  0xc0   :  { %v215_v52 = vpop.f32.mrf.mxu0 }
  0xc1   :  { %289 = vst [vmem:[#allocation3] sm:$0xff] %v215_v52 }
  0xc5   :  { %v218_v53 = vpop.f32.mrf.mxu3 }
  0xc6   :  { %v241_v54 = vpop.f32.mrf.mxu1  ;;  %292 = vst [vmem:[#allocation3 + $0x18] sm:$0xff] %v218_v53 }
  0xc7   :  { %293 = vst [vmem:[#allocation3 + $0x20] sm:$0xff] %v241_v54 }
  0xc8   :  { %307 = dma.vmem_to_hbm [thread:$0]  %s300_s8, 768, %s302_s11, [#allocation4], %s407_s12, %s407_s12, %s408_s13  }
  0xc9   :  { %403 = dma.done.wait [#allocation4], 768  }
  0xca   :  { %404 = vsyncadd [#allocation4], 4294966528 }
  0xcb   :  { %312 = vsyncpa [#allocation4], 1 }

</bundles_post_ra>
